<compile_context>
chip_gen: v7x
topology: tpu7x:2x2x1
jax: 0.10.0
libtpu: 0.0.40
codegen_flags: <defaults>
</compile_context>

<pallas_src>
import math

import jax
import jax.numpy as jnp
import numpy as np
from jax import lax
from jax.experimental import pallas as pl
from jax.experimental.pallas import tpu as pltpu


def _matmul_t(a, b):
    """a @ b.T on the MXU via a transposed-RHS contraction (no materialized .T)."""
    return lax.dot_general(a, b, (((1,), (1,)), ((), ())),
                           preferred_element_type=jnp.float32)


# -----------------------------------------------------------------------------
# Kernels
# -----------------------------------------------------------------------------

def _plastic_linear_rec_kernel_flat(lr_ref, x_ref, lo_ref, w_ref, psf_ref,
                                    e_ref, t_ref, hebb_ref, out_ref, hebb_out_ref):
    """Lane-dense path: hebb is (Bt, N*N) with element [b, i*N + j] == hebb[b, i, j].

    Selector matrices (constant 0/1, resident in VMEM):
      E[i, i*N + j] = 1  -> per-i broadcast across j lanes (and j-reduce via A @ E^T)
      T[j, i*N + j] = 1  -> tiles last_out[b, j] across the i blocks
    """
    lr = lr_ref[0, 0]                    # scalar plastic learning rate (SMEM)
    x = x_ref[...]                       # (Bt, N)
    lo = lo_ref[...]                     # (Bt, N)    last_out
    hebb = hebb_ref[...]                 # (Bt, N*N)  lane-dense hebb

    # Weight term shared for the whole tile: lo @ W^T on the MXU.
    w_term = _matmul_t(lo, w_ref[...])                                   # (Bt, N)

    # lo_tiled[b, i*N+j] = lo[b, j]  (selector matmul, MXU).
    lo_tiled = jnp.dot(lo, t_ref[...], preferred_element_type=jnp.float32)   # (Bt, N*N)

    # Plastic term: plastic[b, i] = sum_j PS[i,j] * hebb[b,i,j] * lo[b,j].
    ph = psf_ref[...] * hebb * lo_tiled                                  # (Bt, N*N) VPU
    plastic = _matmul_t(ph, e_ref[...])                                  # (Bt, N) j-reduce on MXU

    out = jnp.tanh(w_term + plastic + x)                                 # (Bt, N)
    out_ref[...] = out.astype(out_ref.dtype)

    # Oja rule, reorganized:  hebb' = hebb * (1 - lr*out_i^2) + (lr*out_i) * lo_j,
    # with the per-i coefficients broadcast across the j lanes by selector matmuls.
    a = lr * out                                                         # (Bt, N)
    decay = 1.0 - a * out                                                # (Bt, N)
    a_tiled = jnp.dot(a, e_ref[...], preferred_element_type=jnp.float32)        # (Bt, N*N)
    decay_tiled = jnp.dot(decay, e_ref[...], preferred_element_type=jnp.float32)
    hebb_new = hebb * decay_tiled + a_tiled * lo_tiled                   # (Bt, N*N) VPU
    hebb_out_ref[...] = hebb_new.astype(hebb_out_ref.dtype)


def _plastic_linear_rec_kernel_3d(lr_ref, x_ref, lo_ref, w_ref, ps_ref,
                                  hebb_ref, out_ref, hebb_out_ref):
    """3-D path, used when N is already a multiple of 128 (hebb block is lane-dense)."""
    lr = lr_ref[0, 0]
    x = x_ref[...]                        # (Bt, N)
    lo = lo_ref[...]                      # (Bt, N)
    hebb = hebb_ref[...]                  # (Bt, N, N)

    w_term = _matmul_t(lo, w_ref[...])                            # (Bt, N)
    lo_b = lo[:, None, :]                                         # (Bt, 1, N) hoisted
    plastic = jnp.sum(ps_ref[...] * hebb * lo_b, axis=-1)         # (Bt, N) lane reduce

    out = jnp.tanh(w_term + plastic + x)
    out_ref[...] = out.astype(out_ref.dtype)

    a = lr * out
    decay = 1.0 - a * out
    hebb_new = hebb * decay[:, :, None] + a[:, :, None] * lo_b
    hebb_out_ref[...] = hebb_new.astype(hebb_out_ref.dtype)


# -----------------------------------------------------------------------------
# Tiling / VMEM heuristics (padding- and generation-aware)
# -----------------------------------------------------------------------------

def _pad_up(v, m):
    return -(-v // m) * m


def _vmem_capacity_bytes():
    """Physical VMEM of the current generation; conservative fallback = v7x (64 MiB)."""
    try:
        cap = getattr(pltpu.get_tpu_info(), "vmem_capacity_bytes", None)
        if cap:
            return int(cap)
    except Exception:
        pass
    return 64 << 20


def _hebb_row_vmem_bytes(N, itemsize, flat):
    """Padded VMEM bytes of ONE batch row of one hebb block (input or output)."""
    if flat:
        return _pad_up(N * N, 128) * itemsize
    return _pad_up(N, 8) * _pad_up(N, 128) * itemsize


def _choose_batch_tile(B, N, itemsize, flat, budget_bytes, min_steps=4):
    """Pick the batch tile Bt (rows per grid step).

    Legal tiles: Bt divides B and (Bt % 8 == 0 or Bt == B)  [sublane rule].
    Preference:
      1. largest Bt that fits the VMEM budget AND leaves >= min_steps grid steps
         (>= 2 per TensorCore on v7x megacore, real double-buffer overlap everywhere);
      2. relax the step requirement to 2, then 1;
      3. smallest legal Bt (caller raises vmem_limit_bytes to cover it).
    """
    row = _hebb_row_vmem_bytes(N, itemsize, flat)
    per_tile = lambda bt: 4 * _pad_up(bt, 8) * row     # hebb in+out, double-buffered
    cands = sorted({bt for bt in range(8, B + 1, 8) if B % bt == 0} | {B}, reverse=True)
    for steps in (min_steps, 2, 1):
        ok = [bt for bt in cands if per_tile(bt) <= budget_bytes and B // bt >= steps]
        if ok:
            return ok[0]
    # TODO(synk): pad B / masked last block so non-divisor tiles become legal here.
    return cands[-1]


# -----------------------------------------------------------------------------
# Wrapper
# -----------------------------------------------------------------------------

def plastic_linear_rec(x, memory, weight, plastic_scale, plastic_lr):
    """Forward pass. x: (B, N). memory: None or (last_out (B,N), hebb (B,N,N))."""
    B, N = x.shape
    N2 = N * N

    if memory is None:
        # last_out == 0 and hebb == 0  =>  out = tanh(x), hebb' = 0.
        out = jnp.tanh(x)
        hebb_new = jnp.zeros((B, N, N), x.dtype)
        return out, (out, hebb_new)

    last_out, hebb = memory
    lr = jnp.asarray(plastic_lr, jnp.float32).reshape(1, 1)
    itemsize = jnp.dtype(x.dtype).itemsize

    # Lane-dense path when N is not a multiple of 128 (e.g. N=32): a (.., N, N) hebb
    # block would waste 128/N of every vreg/VMEM tile and force masked partial stores.
    use_flat = (N % 128 != 0) and (N <= 128)

    cap = _vmem_capacity_bytes()
    Bt = _choose_batch_tile(B, N, itemsize, use_flat, budget_bytes=cap // 2)
    grid = (B // Bt,)

    if use_flat:
        eye = jnp.eye(N, dtype=x.dtype)
        sel_e = jnp.repeat(eye, N, axis=1)     # (N, N2): E[i, i*N+j] = 1
        sel_t = jnp.tile(eye, (1, N))          # (N, N2): T[j, i*N+j] = 1
        ps_flat = plastic_scale.reshape(1, N2)
        hebb_in = hebb.reshape(B, N2)

        in_specs = [
            pl.BlockSpec(memory_space=pltpu.MemorySpace.SMEM),   # plastic_lr (1,1)
            pl.BlockSpec((Bt, N), lambda b: (b, 0)),             # x
            pl.BlockSpec((Bt, N), lambda b: (b, 0)),             # last_out
            pl.BlockSpec((N, N), lambda b: (0, 0)),              # weight (resident)
            pl.BlockSpec((1, N2), lambda b: (0, 0)),             # plastic_scale flat (resident)
            pl.BlockSpec((N, N2), lambda b: (0, 0)),             # selector E (resident)
            pl.BlockSpec((N, N2), lambda b: (0, 0)),             # selector T (resident)
            pl.BlockSpec((Bt, N2), lambda b: (b, 0)),            # hebb (lane-dense)
        ]
        out_specs = [
            pl.BlockSpec((Bt, N), lambda b: (b, 0)),             # out
            pl.BlockSpec((Bt, N2), lambda b: (b, 0)),            # hebb'
        ]
        out_shape = (jax.ShapeDtypeStruct((B, N), x.dtype),
                     jax.ShapeDtypeStruct((B, N2), hebb.dtype))
        operands = (lr, x, last_out, weight, ps_flat, sel_e, sel_t, hebb_in)
        kernel = _plastic_linear_rec_kernel_flat
        hebb_in_index = 7                         # position of hebb in `operands`
        param_elems = N * N + N2 + 2 * N * N2
        flops = 8 * B * N * N2 + 10 * B * N2      # MXU (weight + selector matmuls) + VPU
        resident_bytes = (_pad_up(N, 8) * _pad_up(N, 128)
                          + 8 * _pad_up(N2, 128)
                          + 2 * _pad_up(N, 8) * _pad_up(N2, 128)) * itemsize
    else:
        hebb_in = hebb
        in_specs = [
            pl.BlockSpec(memory_space=pltpu.MemorySpace.SMEM),   # plastic_lr (1,1)
            pl.BlockSpec((Bt, N), lambda b: (b, 0)),             # x
            pl.BlockSpec((Bt, N), lambda b: (b, 0)),             # last_out
            pl.BlockSpec((N, N), lambda b: (0, 0)),              # weight (resident)
            pl.BlockSpec((N, N), lambda b: (0, 0)),              # plastic_scale (resident)
            pl.BlockSpec((Bt, N, N), lambda b: (b, 0, 0)),       # hebb
        ]
        out_specs = [
            pl.BlockSpec((Bt, N), lambda b: (b, 0)),             # out
            pl.BlockSpec((Bt, N, N), lambda b: (b, 0, 0)),       # hebb'
        ]
        out_shape = (jax.ShapeDtypeStruct((B, N), x.dtype),
                     jax.ShapeDtypeStruct((B, N, N), hebb.dtype))
        operands = (lr, x, last_out, weight, plastic_scale, hebb_in)
        kernel = _plastic_linear_rec_kernel_3d
        hebb_in_index = 5
        param_elems = 2 * N * N
        flops = 2 * B * N2 + 10 * B * N2
        resident_bytes = 2 * _pad_up(N, 8) * _pad_up(N, 128) * itemsize

    # Padding-aware VMEM estimate: double-buffered hebb in/out + resident params +
    # the small (Bt, N) blocks.
    row = _hebb_row_vmem_bytes(N, itemsize, use_flat)
    small_blk = _pad_up(Bt, 8) * _pad_up(N, 128) * itemsize
    est_vmem = 4 * _pad_up(Bt, 8) * row + 2 * resident_bytes + 6 * small_blk

    vmem_limit = None
    if est_vmem > (12 << 20):
        hard_cap = max(16 << 20, min(3 * cap // 4, cap - (16 << 20)))   # ~48MiB@64, ~96MiB@128
        vmem_limit = min(max(est_vmem * 3 // 2, 32 << 20), hard_cap)

    cost = pl.CostEstimate(
        flops=int(flops),
        transcendentals=int(B * N),
        bytes_accessed=int((2 * B * N2 + 4 * B * N + param_elems) * itemsize),
    )

    grid_spec = pltpu.PrefetchScalarGridSpec(
        num_scalar_prefetch=0,
        grid=grid,
        in_specs=in_specs,
        out_specs=out_specs,
    )

    out, hebb_new = pl.pallas_call(
        kernel,
        out_shape=out_shape,
        grid_spec=grid_spec,
        input_output_aliases={hebb_in_index: 1},   # donate hebb input -> hebb' output
        compiler_params=pltpu.CompilerParams(
            dimension_semantics=("parallel",),
            vmem_limit_bytes=vmem_limit,
        ),
        cost_estimate=cost,
    )(*operands)

    if use_flat:
        hebb_new = hebb_new.reshape(B, N, N)
    return out, (out, hebb_new)


# -----------------------------------------------------------------------------
# Pure-JAX reference mirroring the PyTorch forward (oja_rule=True)
# -----------------------------------------------------------------------------

def _ref_step(x, memory, weight, plastic_scale, plastic_lr):
    B, N = x.shape
    if memory is None:
        lo = jnp.zeros((B, N), x.dtype)
        hebb = jnp.zeros((B, N, N), x.dtype)
    else:
        lo, hebb = memory
    w_eff = weight[None] + plastic_scale[None] * hebb            # (B, N, N)
    out = jnp.tanh(jnp.einsum('bk,bjk->bj', lo, w_eff) + x)
    uout = out[:, :, None]                                       # (B, N, 1)
    uin = lo[:, None, :]                                         # (B, 1, N)
    hebb_new = hebb + plastic_lr * uout * (uin - uout * hebb)
    return out, (out, hebb_new)


if __name__ == "__main__":
    B, N = 2, 32  # small shapes consistent with the module (num_features=32)

    # Deterministic parameter init mirroring reset_parameters()
    stdv = 1.0 / math.sqrt(N)
    key = jax.random.PRNGKey(0)
    kw, kp, kx1, kx2, kx3 = jax.random.split(key, 5)
    weight = jax.random.uniform(kw, (N, N), jnp.float32, -stdv, stdv)
    plastic_scale = jax.random.uniform(kp, (N, N), jnp.float32, -stdv, stdv)
    plastic_scale = plastic_scale - jnp.diag(jnp.diag(plastic_scale))  # zero diagonal
    plastic_lr = 0.01  # single_plastic_lr=True

    x1 = jax.random.normal(kx1, (B, N), jnp.float32)
    x2 = jax.random.normal(kx2, (B, N), jnp.float32)
    x3 = jax.random.normal(kx3, (B, N), jnp.float32)

    # Step 1: memory=None (specialized, no kernel); steps 2-3 exercise the kernel
    # with non-zero hebb and the donated hebb buffer.
    out1, mem1 = plastic_linear_rec(x1, None, weight, plastic_scale, plastic_lr)
    out2, mem2 = plastic_linear_rec(x2, mem1, weight, plastic_scale, plastic_lr)
    out3, mem3 = plastic_linear_rec(x3, mem2, weight, plastic_scale, plastic_lr)
    jax.block_until_ready((out3, mem3))

    # Correctness check against the pure-JAX reference
    r_out1, r_mem1 = _ref_step(x1, None, weight, plastic_scale, plastic_lr)
    r_out2, r_mem2 = _ref_step(x2, r_mem1, weight, plastic_scale, plastic_lr)
    r_out3, r_mem3 = _ref_step(x3, r_mem2, weight, plastic_scale, plastic_lr)

    np.testing.assert_allclose(np.asarray(out1), np.asarray(r_out1), rtol=1e-5, atol=1e-5)
    np.testing.assert_allclose(np.asarray(out2), np.asarray(r_out2), rtol=1e-5, atol=1e-5)
    np.testing.assert_allclose(np.asarray(out3), np.asarray(r_out3), rtol=1e-5, atol=1e-5)
    np.testing.assert_allclose(np.asarray(mem2[1]), np.asarray(r_mem2[1]), rtol=1e-5, atol=1e-5)
    np.testing.assert_allclose(np.asarray(mem3[1]), np.asarray(r_mem3[1]), rtol=1e-5, atol=1e-5)

    print("KERNEL_OK")
</pallas_src>

<mosaic_0001>
module attributes {stable_mosaic.version = 11 : i64} {
  func.func @_plastic_linear_rec_kernel_flat(%arg0: i32, %arg1: memref<1x1xf32, #tpu.memory_space<smem>>, %arg2: memref<2x32xf32, #tpu.memory_space<vmem>>, %arg3: memref<2x32xf32, #tpu.memory_space<vmem>>, %arg4: memref<32x32xf32, #tpu.memory_space<vmem>>, %arg5: memref<1x1024xf32, #tpu.memory_space<vmem>>, %arg6: memref<32x1024xf32, #tpu.memory_space<vmem>>, %arg7: memref<32x1024xf32, #tpu.memory_space<vmem>>, %arg8: memref<2x1024xf32, #tpu.memory_space<vmem>>, %arg9: memref<2x32xf32, #tpu.memory_space<vmem>>, %arg10: memref<2x1024xf32, #tpu.memory_space<vmem>>) attributes {dimension_semantics = [#tpu.dimension_semantics<parallel>], iteration_bounds = array<i64: 1>, scalar_prefetch = 0 : i64, scratch_operands = 0 : i64, tpu.core_type = #tpu.core_type<tc>, window_params = [{transform_indices = @transform_0, window_bounds = array<i64: 1, 1>}, {transform_indices = @transform_1, window_bounds = array<i64: 2, 32>}, {transform_indices = @transform_2, window_bounds = array<i64: 2, 32>}, {pipeline_mode = #tpu.pipeline_mode<synchronous>, transform_indices = @transform_3, window_bounds = array<i64: 32, 32>}, {pipeline_mode = #tpu.pipeline_mode<synchronous>, transform_indices = @transform_4, window_bounds = array<i64: 1, 1024>}, {pipeline_mode = #tpu.pipeline_mode<synchronous>, transform_indices = @transform_5, window_bounds = array<i64: 32, 1024>}, {pipeline_mode = #tpu.pipeline_mode<synchronous>, transform_indices = @transform_6, window_bounds = array<i64: 32, 1024>}, {transform_indices = @transform_7, window_bounds = array<i64: 2, 1024>}, {transform_indices = @transform_8, window_bounds = array<i64: 2, 32>}, {transform_indices = @transform_9, window_bounds = array<i64: 2, 1024>}]} {
    %c0 = arith.constant 0 : index
    %c0_0 = arith.constant 0 : index
    %0 = memref.load %arg1[%c0, %c0_0] : memref<1x1xf32, #tpu.memory_space<smem>>
    %c0_1 = arith.constant 0 : index
    %c0_2 = arith.constant 0 : index
    %1 = vector.load %arg2[%c0_1, %c0_2] : memref<2x32xf32, #tpu.memory_space<vmem>>, vector<2x32xf32>
    %c0_3 = arith.constant 0 : index
    %c0_4 = arith.constant 0 : index
    %2 = vector.load %arg3[%c0_3, %c0_4] : memref<2x32xf32, #tpu.memory_space<vmem>>, vector<2x32xf32>
    %c0_5 = arith.constant 0 : index
    %c0_6 = arith.constant 0 : index
    %3 = vector.load %arg8[%c0_5, %c0_6] : memref<2x1024xf32, #tpu.memory_space<vmem>>, vector<2x1024xf32>
    %c0_7 = arith.constant 0 : index
    %c0_8 = arith.constant 0 : index
    %4 = vector.load %arg4[%c0_7, %c0_8] : memref<32x32xf32, #tpu.memory_space<vmem>>, vector<32x32xf32>
    %cst = arith.constant dense<0.000000e+00> : vector<2x32xf32>
    %5 = tpu.matmul %2, %4, %cst {dimension_numbers = #tpu.dot_dimension_numbers<[1], [1], [0], [0], [0, 0, 1, 0], [], []>} : vector<2x32xf32>, vector<32x32xf32>, vector<2x32xf32> -> vector<2x32xf32>
    %c0_9 = arith.constant 0 : index
    %c0_10 = arith.constant 0 : index
    %6 = vector.load %arg7[%c0_9, %c0_10] : memref<32x1024xf32, #tpu.memory_space<vmem>>, vector<32x1024xf32>
    %cst_11 = arith.constant dense<0.000000e+00> : vector<2x1024xf32>
    %7 = tpu.matmul %2, %6, %cst_11 {dimension_numbers = #tpu.dot_dimension_numbers<[1], [0], [0], [1], [0, 0, 1, 1], [], []>} : vector<2x32xf32>, vector<32x1024xf32>, vector<2x1024xf32> -> vector<2x1024xf32>
    %c0_12 = arith.constant 0 : index
    %c0_13 = arith.constant 0 : index
    %8 = vector.load %arg5[%c0_12, %c0_13] : memref<1x1024xf32, #tpu.memory_space<vmem>>, vector<1x1024xf32>
    %9 = vector.broadcast %8 : vector<1x1024xf32> to vector<2x1024xf32>
    %10 = arith.mulf %9, %3 : vector<2x1024xf32>
    %11 = arith.mulf %10, %7 : vector<2x1024xf32>
    %c0_14 = arith.constant 0 : index
    %c0_15 = arith.constant 0 : index
    %12 = vector.load %arg6[%c0_14, %c0_15] : memref<32x1024xf32, #tpu.memory_space<vmem>>, vector<32x1024xf32>
    %cst_16 = arith.constant dense<0.000000e+00> : vector<2x32xf32>
    %13 = tpu.matmul %11, %12, %cst_16 {dimension_numbers = #tpu.dot_dimension_numbers<[1], [1], [0], [0], [0, 0, 1, 0], [], []>} : vector<2x1024xf32>, vector<32x1024xf32>, vector<2x32xf32> -> vector<2x32xf32>
    %14 = arith.addf %5, %13 : vector<2x32xf32>
    %15 = arith.addf %14, %1 : vector<2x32xf32>
    %16 = math.tanh %15 : vector<2x32xf32>
    %c0_17 = arith.constant 0 : index
    %c0_18 = arith.constant 0 : index
    %17 = vector.load %arg9[%c0_17, %c0_18] : memref<2x32xf32, #tpu.memory_space<vmem>>, vector<2x32xf32>
    tpu.vector_store %arg9[%c0_17, %c0_18], %16 {strides = array<i32>} : memref<2x32xf32, #tpu.memory_space<vmem>>, vector<2x32xf32>,
    %18 = vector.broadcast %0 : f32 to vector<2x32xf32>
    %19 = arith.mulf %18, %16 : vector<2x32xf32>
    %20 = arith.mulf %19, %16 : vector<2x32xf32>
    %cst_19 = arith.constant 1.000000e+00 : f32
    %21 = vector.broadcast %cst_19 : f32 to vector<2x32xf32>
    %22 = arith.subf %21, %20 : vector<2x32xf32>
    %c0_20 = arith.constant 0 : index
    %c0_21 = arith.constant 0 : index
    %23 = vector.load %arg6[%c0_20, %c0_21] : memref<32x1024xf32, #tpu.memory_space<vmem>>, vector<32x1024xf32>
    %cst_22 = arith.constant dense<0.000000e+00> : vector<2x1024xf32>
    %24 = tpu.matmul %19, %23, %cst_22 {dimension_numbers = #tpu.dot_dimension_numbers<[1], [0], [0], [1], [0, 0, 1, 1], [], []>} : vector<2x32xf32>, vector<32x1024xf32>, vector<2x1024xf32> -> vector<2x1024xf32>
    %c0_23 = arith.constant 0 : index
    %c0_24 = arith.constant 0 : index
    %25 = vector.load %arg6[%c0_23, %c0_24] : memref<32x1024xf32, #tpu.memory_space<vmem>>, vector<32x1024xf32>
    %cst_25 = arith.constant dense<0.000000e+00> : vector<2x1024xf32>
    %26 = tpu.matmul %22, %25, %cst_25 {dimension_numbers = #tpu.dot_dimension_numbers<[1], [0], [0], [1], [0, 0, 1, 1], [], []>} : vector<2x32xf32>, vector<32x1024xf32>, vector<2x1024xf32> -> vector<2x1024xf32>
    %27 = arith.mulf %3, %26 : vector<2x1024xf32>
    %28 = arith.mulf %24, %7 : vector<2x1024xf32>
    %29 = arith.addf %27, %28 : vector<2x1024xf32>
    %c0_26 = arith.constant 0 : index
    %c0_27 = arith.constant 0 : index
    %30 = vector.load %arg10[%c0_26, %c0_27] : memref<2x1024xf32, #tpu.memory_space<vmem>>, vector<2x1024xf32>
    tpu.vector_store %arg10[%c0_26, %c0_27], %29 {strides = array<i32>} : memref<2x1024xf32, #tpu.memory_space<vmem>>, vector<2x1024xf32>,
    return
  }
  func.func @transform_0(%arg0: i32) -> (i32, i32) {
    %c0_i32 = arith.constant 0 : i32
    %c0_i32_0 = arith.constant 0 : i32
    %c0_i32_1 = arith.constant 0 : i32
    return %c0_i32, %c0_i32_0 : i32, i32
  }
  func.func @transform_1(%arg0: i32) -> (i32, i32) {
    %c0_i32 = arith.constant 0 : i32
    %c0_i32_0 = arith.constant 0 : i32
    return %arg0, %c0_i32 : i32, i32
  }
  func.func @transform_2(%arg0: i32) -> (i32, i32) {
    %c0_i32 = arith.constant 0 : i32
    %c0_i32_0 = arith.constant 0 : i32
    return %arg0, %c0_i32 : i32, i32
  }
  func.func @transform_3(%arg0: i32) -> (i32, i32) {
    %c0_i32 = arith.constant 0 : i32
    %c0_i32_0 = arith.constant 0 : i32
    %c0_i32_1 = arith.constant 0 : i32
    return %c0_i32, %c0_i32_0 : i32, i32
  }
  func.func @transform_4(%arg0: i32) -> (i32, i32) {
    %c0_i32 = arith.constant 0 : i32
    %c0_i32_0 = arith.constant 0 : i32
    %c0_i32_1 = arith.constant 0 : i32
    return %c0_i32, %c0_i32_0 : i32, i32
  }
  func.func @transform_5(%arg0: i32) -> (i32, i32) {
    %c0_i32 = arith.constant 0 : i32
    %c0_i32_0 = arith.constant 0 : i32
    %c0_i32_1 = arith.constant 0 : i32
    return %c0_i32, %c0_i32_0 : i32, i32
  }
  func.func @transform_6(%arg0: i32) -> (i32, i32) {
    %c0_i32 = arith.constant 0 : i32
    %c0_i32_0 = arith.constant 0 : i32
    %c0_i32_1 = arith.constant 0 : i32
    return %c0_i32, %c0_i32_0 : i32, i32
  }
  func.func @transform_7(%arg0: i32) -> (i32, i32) {
    %c0_i32 = arith.constant 0 : i32
    %c0_i32_0 = arith.constant 0 : i32
    return %arg0, %c0_i32 : i32, i32
  }
  func.func @transform_8(%arg0: i32) -> (i32, i32) {
    %c0_i32 = arith.constant 0 : i32
    %c0_i32_0 = arith.constant 0 : i32
    return %arg0, %c0_i32 : i32, i32
  }
  func.func @transform_9(%arg0: i32) -> (i32, i32) {
    %c0_i32 = arith.constant 0 : i32
    %c0_i32_0 = arith.constant 0 : i32
    return %arg0, %c0_i32 : i32, i32
  }
}

</mosaic_0001>

<bundles_post_ra>
// kernel: tpu_custom_call.1
= control target key start
LH: loop header
LB: loop body
LE: loop exit
PB: predicated region body
PF: predicated region fallthrough
CT: control target
= control target key end

     0   :  { %16 = vsyncpa [#allocation4], 0  ;;  %s2292_s0 = inlined_call_operand.<no memory space> [shape: f32[1,1], index: 0, kind: input, shape index: {}]   ;;  %s2293_s1 = inlined_call_operand.vmem [shape: f32[2,32], index: 1, kind: input, shape index: {}]   ;;  %s2294_s2 = inlined_call_operand.vmem [shape: f32[2,32], index: 2, kind: input, shape index: {}]   ;;  %s2295_s3 = inlined_call_operand.vmem [shape: f32[32,32], index: 3, kind: input, shape index: {}]   ;;  %s2296_s4 = inlined_call_operand.vmem [shape: f32[1,1024], index: 4, kind: input, shape index: {}]   ;;  %s2297_s5 = inlined_call_operand.hbm [shape: f32[32,1024], index: 5, kind: input, shape index: {}]   ;;  %s2298_s6 = inlined_call_operand.hbm [shape: f32[32,1024], index: 6, kind: input, shape index: {}]   ;;  %s2299_s7 = inlined_call_operand.hbm [shape: f32[2,1024], index: 7, kind: input, shape index: {}, may-alias: {7,9}]   ;;  %s2300_s8 = inlined_call_operand.hbm [shape: f32[2,32], index: 8, kind: output, shape index: {0}]   ;;  %s2301_s9 = inlined_call_operand.hbm [shape: f32[2,1024], index: 9, kind: output, shape index: {1}, may-alias: {7,9}]  }
   0x1   :  { %17 = vsyncpa [#allocation7], 0 }
   0x2   :  { %18 = vsyncpa [#allocation5], 0 }
   0x3   :  { %19 = vsyncpa [#allocation11], 0  ;;  %s1946_s30 = smov [#allocation6]   ;;  %s1947_s11 = smov [#allocation3]  }
   0x4   :  { %s47_s10 = sshll.u32 %s1946_s30, 4  ;;  %s35_s12 = sshll.u32 %s1947_s11, 4  ;;  %s48_s10 = int_to_ptr.vmem [resolvable:$true] %s47_s10  ;;  %s2007_s12 = int_to_ptr.vmem [resolvable:$true] %s35_s12 }
   0x5   :  { %s1828_s15 = scalar_lea.hbm %s2298_s6, 4096 }
   0x6   :  { %p1829_p0 = scmp.ne.s32.totalorder %s2298_s6, %s1828_s15  ;;  %p1832_p1 = scmp.lt.u32.totalorder %s1828_s15, %s2298_s6 }
   0x8   :  { %p1834_p2 = pnand %p1832_p1, %p1829_p0 }
   0xa   :  { %1837 = shalt.err (!%p1834_p2)
}
   0xb   :  { %s1838_s20 = scalar_lea.vmem %s48_s10, 4096  ;;  %p1843_p4 = scmp.lt.s32.totalorder %s48_s10, %s48_s10 }
   0xc   :  { %p1839_p3 = scmp.ne.s32.totalorder %s48_s10, %s1838_s20  ;;  %p1844_p5 = scmp.lt.s32.totalorder %s1838_s20, %s1838_s20 }
   0xe   :  { %p1845_p6 = por %p1844_p5, %p1843_p4 }
  0x10   :  { %p1846_p7 = pnand %p1845_p6, %p1839_p3 }
  0x12   :  { %1849 = shalt.err (!%p1846_p7)
}
  0x13   :  { %s1948_s21 = smov 1024   ;;  %s1949_s22 = smov 64  }
  0x14   :  { %53 = dma.hbm_to_vmem [thread:$0]  %s2298_s6, 4096, %s48_s10, [#allocation7], %s1948_s21, %s1948_s21, %s1949_s22  }
  0x15   :  { %s1850_s27 = scalar_lea.hbm %s2297_s5, 4096 }
  0x16   :  { %p1851_p8 = scmp.ne.s32.totalorder %s2297_s5, %s1850_s27  ;;  %p1854_p9 = scmp.lt.u32.totalorder %s1850_s27, %s2297_s5 }
  0x18   :  { %p1856_p10 = pnand %p1854_p9, %p1851_p8 }
  0x1a   :  { %1859 = shalt.err (!%p1856_p10)
}
  0x1b   :  { %s1860_s13 = scalar_lea.vmem %s2007_s12, 4096  ;;  %p1865_p12 = scmp.lt.s32.totalorder %s2007_s12, %s2007_s12 }
  0x1c   :  { %p1861_p11 = scmp.ne.s32.totalorder %s2007_s12, %s1860_s13  ;;  %p1866_p13 = scmp.lt.s32.totalorder %s1860_s13, %s1860_s13 }
  0x1e   :  { %p1867_p0 = por %p1866_p13, %p1865_p12 }
  0x20   :  { %p1868_p1 = pnand %p1867_p0, %p1861_p11 }
  0x22   :  { %1871 = shalt.err (!%p1868_p1)
}
  0x23   :  { %41 = dma.hbm_to_vmem [thread:$0]  %s2297_s5, 4096, %s2007_s12, [#allocation4], %s1948_s21, %s1948_s21, %s1949_s22  }
  0x24   :  { %s1950_s14 = smov [#allocation8]   ;;  %s1872_s18 = scalar_lea.hbm %s2299_s7, 256 }
  0x25   :  { %s60_s15 = sshll.u32 %s1950_s14, 4  ;;  %p1873_p2 = scmp.ne.s32.totalorder %s2299_s7, %s1872_s18  ;;  %s61_s15 = int_to_ptr.vmem [resolvable:$true] %s60_s15 }
  0x26   :  { %p1876_p3 = scmp.lt.u32.totalorder %s1872_s18, %s2299_s7 }
  0x28   :  { %p1878_p4 = pnand %p1876_p3, %p1873_p2 }
  0x2a   :  { %1881 = shalt.err (!%p1878_p4)
}
  0x2b   :  { %s1882_s25 = scalar_lea.vmem %s61_s15, 256  ;;  %p1887_p6 = scmp.lt.s32.totalorder %s61_s15, %s61_s15 }
  0x2c   :  { %p1883_p5 = scmp.ne.s32.totalorder %s61_s15, %s1882_s25  ;;  %p1888_p7 = scmp.lt.s32.totalorder %s1882_s25, %s1882_s25 }
  0x2e   :  { %p1889_p8 = por %p1888_p7, %p1887_p6 }
  0x30   :  { %p1890_p9 = pnand %p1889_p8, %p1883_p5 }
  0x32   :  { %1893 = shalt.err (!%p1890_p9)
}
  0x33   :  { %63 = dma.hbm_to_vmem [thread:$0]  %s2299_s7, 256, %s61_s15, [#allocation7]  }
  0x34   :  { %1938 = dma.done.wait [#allocation4], 4096  }
  0x35   :  { %1939 = vsyncadd [#allocation4], 4294963200 }
  0x36   :  { %1940 = dma.done.wait [#allocation7], 4352  }
  0x37   :  { %1941 = vsyncadd [#allocation7], 4294962944  ;;  %v1951_v0 = vmov 0.0   ;;  %v83_v1 = vld [vmem:[#allocation6 + $0x8] sm:$0xff]  ;;  %v85_v3 = vld [vmem:[#allocation6 + $0x18] sm:$0xff]  ;;  %vm114_vm0 = vcmask 261120  }
  0x38   :  { %182 = vmatprep.mubr.f32.mxu0 %v1951_v0  ;;  %253 = vmatprep.mubr.f32.mxu1 %v1951_v0  ;;  %v91_v2 = vld [vmem:[#allocation6 + $0x48] sm:$0xff]  ;;  %v93_v5 = vld [vmem:[#allocation6 + $0x58] sm:$0xff]  ;;  %v82_v6 = vld [vmem:[#allocation6] sm:$0xff]  ;;  %vm1954_vm2 = vmmov 0   ;;  %vm900_vm3 = vcmask 254976  }
  0x39   :  { %v1677_v4 = vpack.c.bf16 %v91_v2, %v83_v1  ;;  %v90_v7 = vld [vmem:[#allocation6 + $0x40] sm:$0xff]  ;;  %v1685_v8 = vpack.c.bf16 %v93_v5, %v85_v3  ;;  %v84_v10 = vld [vmem:[#allocation6 + $0x10] sm:$0xff]  ;;  %v99_v12 = vld [vmem:[#allocation6 + $0x88] sm:$0xff] }
  0x3a   :  { %v1679_v9 = vpack.c.bf16 %v90_v7, %v82_v6  ;;  %v92_v11 = vld [vmem:[#allocation6 + $0x50] sm:$0xff]  ;;  %v107_v14 = vld [vmem:[#allocation6 + $0xc8] sm:$0xff]  ;;  %v101_v15 = vld [vmem:[#allocation6 + $0x98] sm:$0xff] }
  0x3b   :  { %1678 = vmatprep.subr.bf16.mxu0 %v1677_v4  ;;  %v1687_v13 = vpack.c.bf16 %v92_v11, %v84_v10  ;;  %v109_v16 = vld [vmem:[#allocation6 + $0xd8] sm:$0xff]  ;;  %1686 = vmatprep.subr.bf16.mxu1 %v1685_v8  ;;  %v1681_v17 = vpack.c.bf16 %v107_v14, %v99_v12  ;;  %v98_v19 = vld [vmem:[#allocation6 + $0x80] sm:$0xff]  ;;  %v100_v21 = vld [vmem:[#allocation6 + $0x90] sm:$0xff] }
  0x3c   :  { %1680 = vmatpush1.bf16.msra.mxu0 %v1679_v9  ;;  %v1689_v18 = vpack.c.bf16 %v109_v16, %v101_v15  ;;  %v106_v20 = vld [vmem:[#allocation6 + $0xc0] sm:$0xff]  ;;  %v108_v23 = vld [vmem:[#allocation6 + $0xd0] sm:$0xff]  ;;  %v87_v24 = vld [vmem:[#allocation6 + $0x28] sm:$0xff] }
  0x3d   :  { %1688 = vmatpush1.bf16.msra.mxu1 %v1687_v13  ;;  %v1683_v22 = vpack.c.bf16 %v106_v20, %v98_v19  ;;  %1682 = vmatprep.subr.bf16.mxu0 %v1681_v17  ;;  %v1691_v25 = vpack.c.bf16 %v108_v23, %v100_v21  ;;  %v2055_v26 = vld [vmem:[%s2294_s2] sm:$0x3]  ;;  %v95_v27 = vld [vmem:[#allocation6 + $0x68] sm:$0xff]  ;;  %v89_v31 = vld [vmem:[#allocation6 + $0x38] sm:$0xff]  ;;  %v404_v17 = vlaneseq }
  0x3e   :  { %1690 = vmatprep.subr.bf16.mxu1 %v1689_v18  ;;  %v86_v28 = vld [vmem:[#allocation6 + $0x20] sm:$0xff]  ;;  %v1693_v30 = vpack.c.bf16 %v95_v27, %v87_v24  ;;  %v97_v32 = vld [vmem:[#allocation6 + $0x78] sm:$0xff]  ;;  %v88_v33 = vld [vmem:[#allocation6 + $0x30] sm:$0xff]  ;;  %v1952_v18 = vmov 1983009808  }
  0x3f   :  { %v94_v29 = vld [vmem:[#allocation6 + $0x60] sm:$0xff]  ;;  %v1701_v35 = vpack.c.bf16 %v97_v32, %v89_v31  ;;  %v96_v36 = vld [vmem:[#allocation6 + $0x70] sm:$0xff]  ;;  %v103_v37 = vld [vmem:[#allocation6 + $0xa8] sm:$0xff]  ;;  %v448_v19 = vunpack.c.l.s4 %v1952_v18  ;;  %v2097_v20 = vshrl.u32 %v404_v17, 7 }
  0x40   :  { %1684 = vmatpush1.bf16.msra.mxu0 %v1683_v22  ;;  %v1695_v34 = vpack.c.bf16 %v94_v29, %v86_v28  ;;  %v111_v38 = vld [vmem:[#allocation6 + $0xe8] sm:$0xff]  ;;  %v1703_v39 = vpack.c.bf16 %v96_v36, %v88_v33  ;;  %v102_v41 = vld [vmem:[#allocation6 + $0xa0] sm:$0xff]  ;;  %v105_v43 = vld [vmem:[#allocation6 + $0xb8] sm:$0xff] }
  0x41   :  { %1692 = vmatpush1.bf16.msra.mxu1 %v1691_v25  ;;  %1694 = vmatprep.subr.bf16.mxu0 %v1693_v30  ;;  %v1697_v40 = vpack.c.bf16 %v111_v38, %v103_v37  ;;  %v110_v42 = vld [vmem:[#allocation6 + $0xe0] sm:$0xff]  ;;  %v113_v44 = vld [vmem:[#allocation6 + $0xf8] sm:$0xff]  ;;  %v104_v45 = vld [vmem:[#allocation6 + $0xb0] sm:$0xff]  ;;  %v449_v21 = vunpack.c.0.s8 %v448_v19  ;;  %v414_v27 = vsub.s32 2, %v2097_v20  ;;  %v410_v28 = vsub.s32 1, %v2097_v20 }
  0x42   :  { %1702 = vmatprep.subr.bf16.mxu1 %v1701_v35  ;;  %v112_v46 = vld [vmem:[#allocation6 + $0xf0] sm:$0xff]  ;;  %v1705_v47 = vpack.c.bf16 %v113_v44, %v105_v43  ;;  %v505_v48 = vld [vmem:[#allocation3 + $0x8] sm:$0xff]  ;;  %v1699_v50 = vpack.c.bf16 %v110_v42, %v102_v41  ;;  %v507_v51 = vld [vmem:[#allocation3 + $0x18] sm:$0xff]  ;;  %v406_v30 = vsub.s32 0, %v2097_v20  ;;  %v418_v32 = vsub.s32 3, %v2097_v20 }
  0x43   :  { %1644 = vmatmul.mubr.msk.f32.vlgmr.msra.gmra.mrb[0].mxu0 %vm114_vm0, %v2055_v26  ;;  %v513_v49 = vld [vmem:[#allocation3 + $0x48] sm:$0xff]  ;;  %v515_v52 = vld [vmem:[#allocation3 + $0x58] sm:$0xff]  ;;  %v1707_v53 = vpack.c.bf16 %v112_v46, %v104_v45  ;;  %v504_v56 = vld [vmem:[#allocation3] sm:$0xff]  ;;  %v2102_v23 = vsub.s32 %v449_v21, %v2097_v20  ;;  %v422_v21 = vsub.s32 4, %v2097_v20 }
  0x44   :  { %1645 = vmatmul.mubr.msk.f32.vlgmr.msra.gmra.mrb[0].mxu1 %vm114_vm0, %v2055_v26  ;;  %1696 = vmatpush1.bf16.msra.mxu0 %v1695_v34  ;;  %v2061_v54 = vpack.c.bf16 %v513_v49, %v505_v48  ;;  %v2064_v55 = vpack.c.bf16 %v515_v52, %v507_v51  ;;  %v512_v57 = vld [vmem:[#allocation3 + $0x40] sm:$0xff]  ;;  %v506_v58 = vld [vmem:[#allocation3 + $0x10] sm:$0xff]  ;;  %v521_v60 = vld [vmem:[#allocation3 + $0x88] sm:$0xff] }
  0x45   :  { %1704 = vmatpush1.bf16.msra.mxu1 %v1703_v39  ;;  %1698 = vmatprep.subr.bf16.mxu0 %v1697_v40  ;;  %v514_v59 = vld [vmem:[#allocation3 + $0x50] sm:$0xff]  ;;  %v529_v61 = vld [vmem:[#allocation3 + $0xc8] sm:$0xff]  ;;  %v523_v62 = vld [vmem:[#allocation3 + $0x98] sm:$0xff]  ;;  %v2073_v1 = vpack.c.bf16 %v512_v57, %v504_v56  ;;  %v434_v56 = vsub.s32 7, %v2097_v20 }
  0x46   :  { %1706 = vmatprep.subr.bf16.mxu1 %v1705_v47  ;;  %324 = vmatprep.mubr.f32.mxu0 %v1951_v0  ;;  %v531_v63 = vld [vmem:[#allocation3 + $0xd8] sm:$0xff]  ;;  %v2075_v2 = vpack.c.bf16 %v514_v59, %v506_v58  ;;  %v2077_v3 = vpack.c.bf16 %v529_v61, %v521_v60  ;;  %v520_v5 = vld [vmem:[#allocation3 + $0x80] sm:$0xff]  ;;  %v522_v7 = vld [vmem:[#allocation3 + $0x90] sm:$0xff] }
  0x47   :  { %395 = vmatprep.mubr.f32.mxu1 %v1951_v0  ;;  %v2079_v4 = vpack.c.bf16 %v531_v63, %v523_v62  ;;  %v528_v6 = vld [vmem:[#allocation3 + $0xc0] sm:$0xff]  ;;  %v530_v8 = vld [vmem:[#allocation3 + $0xd0] sm:$0xff]  ;;  %v509_v11 = vld [vmem:[#allocation3 + $0x28] sm:$0xff] }
  0x48   :  { %1700 = vmatpush1.bf16.msra.mxu0 %v1699_v50  ;;  %v2085_v9 = vpack.c.bf16 %v528_v6, %v520_v5  ;;  %v2087_v10 = vpack.c.bf16 %v530_v8, %v522_v7  ;;  %v517_v12 = vld [vmem:[#allocation3 + $0x68] sm:$0xff]  ;;  %v511_v14 = vld [vmem:[#allocation3 + $0x38] sm:$0xff]  ;;  %v2099_v22 = vld [vmem:[#allocation8] sm:$0xff]  ;;  %v426_v50 = vsub.s32 5, %v2097_v20 }
  0x49   :  { %1708 = vmatpush1.bf16.msra.mxu1 %v1707_v53  ;;  %1710 = vmatprep.subr.bf16.mxu0 %v2061_v54  ;;  %v2091_v13 = vpack.c.bf16 %v517_v12, %v509_v11  ;;  %v519_v15 = vld [vmem:[#allocation3 + $0x78] sm:$0xff]  ;;  %v446_v24 = vcombine.high %v2099_v22, %v2099_v22  ;;  %v453_v25 = vrot.slane %v2099_v22, %v2102_v23  ;;  %v2113_v29 = vld [vmem:[%s2296_s4] sm:$0xff]  ;;  %v2118_v33 = vld [vmem:[#allocation8 + $0x8] sm:$0xff] }
  0x4a   :  { %1718 = vmatprep.subr.bf16.mxu1 %v2064_v55  ;;  %v2094_v16 = vpack.c.bf16 %v519_v15, %v511_v14  ;;  %v415_v34 = vrot.slane %v2113_v29, %v414_v27  ;;  %v411_v35 = vrot.slane %v2113_v29, %v410_v28  ;;  %v407_v37 = vrot.slane %v2113_v29, %v406_v30  ;;  %v508_v41 = vld [vmem:[#allocation3 + $0x20] sm:$0xff]  ;;  %v510_v43 = vld [vmem:[#allocation3 + $0x30] sm:$0xff]  ;;  %v525_v47 = vld [vmem:[#allocation3 + $0xa8] sm:$0xff] }
  0x4b   :  { %1646 = vmatmul.mubr.msk.f32.vlgmr.msra.gmra.mrb[2].mxu0 %vm114_vm0, %v2055_v26  ;;  %v460_v31 = vrot.slane %v446_v24, %v2102_v23  ;;  %v461_v36 = vcombine.high %v453_v25, %v453_v25  ;;  %v419_v38 = vrot.slane %v2113_v29, %v418_v32  ;;  %v463_v40 = vcombine.high %v2118_v33, %v2118_v33  ;;  %v516_v42 = vld [vmem:[#allocation3 + $0x60] sm:$0xff]  ;;  %v518_v46 = vld [vmem:[#allocation3 + $0x70] sm:$0xff]  ;;  %v533_v48 = vld [vmem:[#allocation3 + $0xe8] sm:$0xff] }
  0x4c   :  { %1647 = vmatmul.mubr.msk.f32.vlgmr.msra.gmra.mrb[2].mxu1 %vm114_vm0, %v2055_v26  ;;  %v470_v49 = vrot.slane %v2118_v33, %v2102_v23  ;;  %v488_v51 = vmul.f32 %v453_v25, %v407_v37  ;;  %v2137_v60 = vpack.c.bf16 %v516_v42, %v508_v41  ;;  %v2139_v61 = vpack.c.bf16 %v518_v46, %v510_v43  ;;  %v527_v63 = vld [vmem:[#allocation3 + $0xb8] sm:$0xff]  ;;  %v524_v27 = vld [vmem:[#allocation3 + $0xa0] sm:$0xff]  ;;  %v526_v32 = vld [vmem:[#allocation3 + $0xb0] sm:$0xff] }
  0x4d   :  { %v462_v39 = vcombine.high %v460_v31, %v460_v31  ;;  %v490_v44 = vmul.f32 %v460_v31, %v415_v34  ;;  %v489_v45 = vmul.f32 %v461_v36, %v411_v35  ;;  %v477_v53 = vrot.slane %v463_v40, %v2102_v23  ;;  %v535_v5 = vld [vmem:[#allocation3 + $0xf8] sm:$0xff]  ;;  %v532_v28 = vld [vmem:[#allocation3 + $0xe0] sm:$0xff]  ;;  %v534_v34 = vld [vmem:[#allocation3 + $0xf0] sm:$0xff] }
  0x4e   :  { %v2141_v62 = vpack.c.bf16 %v533_v48, %v525_v47  ;;  %v427_v11 = vrot.slane %v2113_v29, %v426_v50  ;;  %v478_v12 = vcombine.high %v470_v49, %v470_v49  ;;  %v435_v17 = vrot.slane %v2113_v29, %v434_v56  ;;  %v79_v46 = vld [vmem:[%s2295_s3 + $0x8] sm:$0xff]  ;;  %vm1743_vm1 = vmpackc.low %vm114_vm0, %vm114_vm0  ;;  %v80_v50 = vld [vmem:[%s2295_s3 + $0x10] sm:$0xff] }
  0x4f   :  { %v491_v52 = vmul.f32 %v462_v39, %v419_v38  ;;  %v479_v18 = vcombine.high %v477_v53, %v477_v53  ;;  %v2151_v19 = vpack.c.bf16 %v535_v5, %v527_v63  ;;  %v430_v25 = vsub.s32 6, %v2097_v20 }
  0x50   :  { %v493_v24 = vmul.f32 %v478_v12, %v427_v11  ;;  %v423_v35 = vrot.slane %v2113_v29, %v422_v21  ;;  %v2166_v20 = vpack.c.bf16 %v532_v28, %v524_v27  ;;  %v2172_v41 = vpack.c.bf16 %v534_v34, %v526_v32 }
  0x51   :  { %1712 = vmatpush1.bf16.xpose.msra.mxu0 %v2073_v1  ;;  %v495_v30 = vmul.f32 %v479_v18, %v435_v17  ;;  %v431_v39 = vrot.slane %v2113_v29, %v430_v25  ;;  %v78_v29 = vld [vmem:[%s2295_s3] sm:$0xff] }
  0x52   :  { %1720 = vmatpush1.bf16.xpose.msra.mxu1 %v2075_v2  ;;  %1714 = vmatprep.subr.bf16.mxu0 %v2077_v3  ;;  %v492_v43 = vmul.f32 %v470_v49, %v423_v35  ;;  %v1742_v49 = vpack.c.bf16 %v79_v46, %v78_v29  ;;  %v74_v17 = vld [vmem:[%s2293_s1] sm:$0x3] }
  0x53   :  { %1722 = vmatprep.subr.bf16.mxu1 %v2079_v4 }
  0x59   :  { %1716 = vmatpush1.bf16.xpose.msra.mxu0 %v2085_v9 }
  0x5a   :  { %1724 = vmatpush1.bf16.xpose.msra.mxu1 %v2087_v10  ;;  %1726 = vmatprep.subr.bf16.mxu0 %v2091_v13 }
  0x5b   :  { %1734 = vmatprep.subr.bf16.mxu1 %v2094_v16 }
 0x116   :  { %v2131_v57 = vpop.f32.mrb[0].mxu0 }
 0x117   :  { %v2133_v58 = vpop.f32.mrb[0].mxu1  ;;  %v2135_v59 = vpop.f32.mrb[1].mxu0  ;;  %v496_v14 = vmul.f32 %v488_v51, %v2131_v57  ;;  %v81_v51 = vld [vmem:[%s2295_s3 + $0x18] sm:$0xff] }
 0x118   :  { %v498_v6 = vmul.f32 %v490_v44, %v2133_v58  ;;  %v497_v7 = vmul.f32 %v489_v45, %v2135_v59  ;;  %v2145_v8 = vpop.f32.mrb[1].mxu1  ;;  %v494_v44 = vmul.f32 %v477_v53, %v431_v39  ;;  %v1953_v45 = vmov 0.0|0.0  }
 0x119   :  { %v499_v15 = vmul.f32 %v491_v52, %v2145_v8  ;;  %v1746_v52 = vpack.c.bf16 %v81_v51, %v80_v50 }
 0x11a   :  { %600 = vmatprep.mubr.f32.mxu0 %v497_v7 }
 0x11b   :  { %670 = vmatprep.mubr.f32.mxu1 %v499_v15  ;;  %601 = vmatmul.mubr.f32.vlgmr.msra.gmra.mrb[4].mxu0 %v496_v14 }
 0x11c   :  { %671 = vmatmul.mubr.f32.vlgmr.msra.gmra.mrb[4].mxu1 %v498_v6  ;;  %1728 = vmatpush1.bf16.xpose.msra.mxu0 %v2137_v60 }
 0x11d   :  { %1736 = vmatpush1.bf16.xpose.msra.mxu1 %v2139_v61  ;;  %1730 = vmatprep.subr.bf16.mxu0 %v2141_v62 }
 0x11e   :  { %1738 = vmatprep.subr.bf16.mxu1 %v2151_v19  ;;  %v2159_v31 = vpop.f32.mrb[2].mxu0 }
 0x11f   :  { %v2162_v36 = vpop.f32.mrb[3].mxu0  ;;  %v2164_v37 = vpop.f32.mrb[2].mxu1  ;;  %v500_v47 = vmul.f32 %v492_v43, %v2159_v31 }
 0x120   :  { %v501_v38 = vmul.f32 %v493_v24, %v2162_v36  ;;  %v2170_v40 = vpop.f32.mrb[3].mxu1  ;;  %v502_v48 = vmul.f32 %v494_v44, %v2164_v37 }
 0x121   :  { %v503_v42 = vmul.f32 %v495_v30, %v2170_v40 }
 0x122   :  { %740 = vmatprep.mubr.f32.mxu0 %v501_v38 }
 0x123   :  { %810 = vmatprep.mubr.f32.mxu1 %v503_v42 }
 0x124   :  { %1732 = vmatpush1.bf16.xpose.msra.mxu0 %v2166_v20 }
 0x125   :  { %1740 = vmatpush1.bf16.xpose.msra.mxu1 %v2172_v41  ;;  %1741 = vmatprep.subr.bf16.mxu0 %v1953_v45 }
 0x126   :  { %1750 = vmatprep.subr.bf16.mxu1 %v2061_v54 }
 0x12b   :  { %741 = vmatmul.mubr.f32.vlgmr.msra.gmra.mrb[6].mxu0 %v500_v47 }
 0x12c   :  { %1744 = vmatpush3.bf16.xpose.msk.msra.mxu0 %vm1743_vm1, %v1742_v49  ;;  %811 = vmatmul.mubr.f32.vlgmr.msra.gmra.mrb[6].mxu1 %v502_v48 }
 0x12d   :  { %1745 = vmatprep.subr.bf16.mxu0 %v1953_v45  ;;  %1674 = vmatprep.mubr.msk.f32.mxu0 %vm1954_vm2, %v1951_v0 }
 0x12e   :  { %1752 = vmatpush1.bf16.msra.mxu1 %v2073_v1  ;;  %1005 = vmatprep.mubr.f32.mxu1 %v1951_v0 }
 0x12f   :  { %1754 = vmatprep.subr.bf16.mxu1 %v2077_v3 }
 0x132   :  { %1756 = vmatpush1.bf16.msra.mxu1 %v2085_v9 }
 0x133   :  { %1758 = vmatprep.subr.bf16.mxu1 %v2064_v55 }
 0x134   :  { %1748 = vmatpush3.bf16.xpose.msk.msra.mxu0 %vm1743_vm1, %v1746_v52 }
 0x135   :  { %1766 = vmatprep.subr.bf16.mxu0 %v2091_v13 }
 0x13b   :  { %1675 = vmatmul.mubr.msk.f32.vlgmr.msra.gmra.mrb[8].mxu0 %vm114_vm0, %v2055_v26 }
 0x13c   :  { %1768 = vmatpush1.bf16.msra.mxu0 %v2137_v60  ;;  %1147 = vmatprep.mubr.f32.mxu0 %v1951_v0 }
 0x13d   :  { %1770 = vmatprep.subr.bf16.mxu0 %v2141_v62 }
 0x140   :  { %1772 = vmatpush1.bf16.msra.mxu0 %v2166_v20 }
 0x141   :  { %1782 = vmatprep.subr.bf16.mxu0 %v2061_v54  ;;  %v902_v54 = vstv %s2292_s0  ;;  %s1955_s0 = smov [#allocation9]  }
 0x142   :  { %s1620_s1 = sshll.u32 %s1955_s0, 4  ;;  %s1621_s1 = int_to_ptr.vmem [resolvable:$true] %s1620_s1 }
 0x143   :  { %s1894_s15 = scalar_lea.vmem %s1621_s1, 32  ;;  %p1899_p11 = scmp.lt.s32.totalorder %s1621_s1, %s1621_s1 }
 0x144   :  { %p1895_p10 = scmp.ne.s32.totalorder %s1621_s1, %s1894_s15  ;;  %p1900_p12 = scmp.lt.s32.totalorder %s1894_s15, %s1894_s15 }
 0x146   :  { %p1901_p13 = por %p1900_p12, %p1899_p11 }
 0x148   :  { %p1902_p0 = pnand %p1901_p13, %p1895_p10 }
 0x1ee   :  { %v602_v53 = vpop.f32.mrb[4].mxu0 }
 0x1ef   :  { %v672_v56 = vpop.f32.mrb[4].mxu1  ;;  %v604_v63 = vpop.f32.mrb[5].mxu0 }
 0x1f0   :  { %v673_v5 = vadd.f32 %v672_v56, %v602_v53  ;;  %v674_v6 = vpop.f32.mrb[5].mxu1 }
 0x1fe   :  { %v742_v7 = vpop.f32.mrb[6].mxu0 }
 0x1ff   :  { %v743_v11 = vadd.f32 %v742_v7, %v673_v5  ;;  %v744_v12 = vpop.f32.mrb[7].mxu0  ;;  %v812_v14 = vpop.f32.mrb[6].mxu1 }
 0x200   :  { %v814_v26 = vpop.f32.mrb[7].mxu1 }
 0x201   :  { %v813_v15 = vadd.f32 %v812_v14, %v743_v11 }
 0x20e   :  { %v894_v18 = vpop.f32.mrb[8].mxu0 }
 0x20f   :  { %v895_v21 = vadd.f32 %v894_v18, %v813_v15  ;;  %v1676_v24 = vpop.f32.mrb[9].mxu0 }
 0x211   :  { %v898_v25 = vadd.f32 %v895_v21, %v74_v17 }
 0x213   :  { %1826 = vtanh.f32 %v898_v25 }
 0x21d   :  { %v1827_v27 = vpop.eup %1826 }
 0x21e   :  { %v903_v28 = vmul.f32 %v1827_v27, %v902_v54  ;;  %901 = vst.msk [vmem:[#allocation9] sm:$0x3] %vm900_vm3, %v1827_v27 }
 0x220   :  { %1653 = vmatmul.mubr.msk.f32.vlgmr.msra.gmra.mrb[8].mxu1 %vm114_vm0, %v903_v28  ;;  %1655 = vmatmul.mubr.msk.f32.vlgmr.msra.gmra.mrb[10].mxu0 %vm114_vm0, %v903_v28  ;;  %v904_v30 = vmul.f32 %v1827_v27, %v903_v28 }
 0x221   :  { %1760 = vmatpush1.bf16.msra.mxu1 %v2075_v2  ;;  %1784 = vmatpush1.bf16.msra.mxu0 %v2073_v1 }
 0x222   :  { %1762 = vmatprep.subr.bf16.mxu1 %v2079_v4  ;;  %1786 = vmatprep.subr.bf16.mxu0 %v2077_v3  ;;  %v905_v32 = vsub.f32 1.0, %v904_v30 }
 0x223   :  { %1076 = vmatprep.mubr.f32.mxu1 %v1951_v0  ;;  %1292 = vmatprep.mubr.f32.mxu0 %v1951_v0 }
 0x225   :  { %1764 = vmatpush1.bf16.msra.mxu1 %v2087_v10  ;;  %1788 = vmatpush1.bf16.msra.mxu0 %v2085_v9 }
 0x226   :  { %1774 = vmatprep.subr.bf16.mxu1 %v2094_v16  ;;  %1798 = vmatprep.subr.bf16.mxu0 %v2091_v13 }
 0x228   :  { %1654 = vmatmul.mubr.msk.f32.vlgmr.msra.gmra.mrb[10].mxu1 %vm114_vm0, %v903_v28  ;;  %1657 = vmatmul.mubr.msk.f32.vlgmr.msra.gmra.mrb[12].mxu0 %vm114_vm0, %v905_v32 }
 0x229   :  { %1776 = vmatpush1.bf16.msra.mxu1 %v2139_v61  ;;  %1800 = vmatpush1.bf16.msra.mxu0 %v2137_v60 }
 0x22a   :  { %1778 = vmatprep.subr.bf16.mxu1 %v2151_v19  ;;  %1802 = vmatprep.subr.bf16.mxu0 %v2141_v62 }
 0x22b   :  { %1218 = vmatprep.mubr.f32.mxu1 %v1951_v0  ;;  %1434 = vmatprep.mubr.f32.mxu0 %v1951_v0 }
 0x22d   :  { %1780 = vmatpush1.bf16.msra.mxu1 %v2172_v41  ;;  %1804 = vmatpush1.bf16.msra.mxu0 %v2166_v20 }
 0x22e   :  { %1790 = vmatprep.subr.bf16.mxu1 %v2064_v55 }
 0x230   :  { %1656 = vmatmul.mubr.msk.f32.vlgmr.msra.gmra.mrb[12].mxu1 %vm114_vm0, %v903_v28  ;;  %1659 = vmatmul.mubr.msk.f32.vlgmr.msra.gmra.mrb[14].mxu0 %vm114_vm0, %v905_v32 }
 0x231   :  { %1792 = vmatpush1.bf16.msra.mxu1 %v2075_v2  ;;  %1363 = vmatprep.mubr.f32.mxu1 %v1951_v0 }
 0x232   :  { %1794 = vmatprep.subr.bf16.mxu1 %v2079_v4 }
 0x235   :  { %1796 = vmatpush1.bf16.msra.mxu1 %v2087_v10 }
 0x236   :  { %1806 = vmatprep.subr.bf16.mxu1 %v2094_v16 }
 0x238   :  { %1658 = vmatmul.mubr.msk.f32.vlgmr.msra.gmra.mrb[14].mxu1 %vm114_vm0, %v905_v32 }
 0x239   :  { %1808 = vmatpush1.bf16.msra.mxu1 %v2139_v61  ;;  %1505 = vmatprep.mubr.f32.mxu1 %v1951_v0 }
 0x23a   :  { %1810 = vmatprep.subr.bf16.mxu1 %v2151_v19 }
 0x23d   :  { %1812 = vmatpush1.bf16.msra.mxu1 %v2172_v41 }
 0x240   :  { %1660 = vmatmul.mubr.msk.f32.vlgmr.msra.gmra.mrb[16].mxu1 %vm114_vm0, %v905_v32 }
 0x241   :  { %1905 = shalt.err (!%p1902_p0)
}
 0x242   :  { %s1906_s18 = scalar_lea.hbm %s2300_s8, 32 }
 0x243   :  { %p1907_p1 = scmp.ne.s32.totalorder %s2300_s8, %s1906_s18  ;;  %p1910_p2 = scmp.lt.u32.totalorder %s1906_s18, %s2300_s8 }
 0x245   :  { %p1912_p3 = pnand %p1910_p2, %p1907_p1 }
 0x247   :  { %1915 = shalt.err (!%p1912_p3)
}
 0x248   :  { %1623 = dma.vmem_to_hbm [thread:$0]  %s1621_s1, 32, %s2300_s8, [#allocation5]  }
 0x249   :  { %s1956_s8 = smov [#allocation10]  }
 0x24a   :  { %s1630_s12 = sshll.u32 %s1956_s8, 4  ;;  %s1631_s12 = int_to_ptr.vmem [resolvable:$true] %s1630_s12 }
 0x24b   :  { %s1916_s7 = scalar_lea.vmem %s1631_s12, 256  ;;  %p1921_p5 = scmp.lt.s32.totalorder %s1631_s12, %s1631_s12 }
 0x24c   :  { %p1917_p4 = scmp.ne.s32.totalorder %s1631_s12, %s1916_s7  ;;  %p1922_p6 = scmp.lt.s32.totalorder %s1916_s7, %s1916_s7 }
 0x24e   :  { %p1923_p7 = por %p1922_p6, %p1921_p5 }
 0x250   :  { %p1924_p8 = pnand %p1923_p7, %p1917_p4 }
 0x2f3   :  { %v1007_v0 = vpop.f32.mrb[8].mxu1  ;;  %v1149_v55 = vpop.f32.mrb[10].mxu0 }
 0x2f4   :  { %v1558_v1 = vmul.f32 %v1007_v0, %v2131_v57  ;;  %v1562_v2 = vmul.f32 %v1149_v55, %v2159_v31  ;;  %v1009_v3 = vpop.f32.mrb[9].mxu1  ;;  %v1151_v4 = vpop.f32.mrb[11].mxu0 }
 0x2f5   :  { %v1559_v9 = vmul.f32 %v1009_v3, %v2135_v59  ;;  %v1563_v10 = vmul.f32 %v1151_v4, %v2162_v36 }
 0x2f7   :  { %v1574_v13 = vcombine.low %v1558_v1, %v1559_v9  ;;  %v1591_v16 = vcombine.low %v1562_v2, %v1563_v10 }
 0x2f9   :  { %v1582_v31 = vrot.slane %v1574_v13, %v2102_v23  ;;  %v1599_v29 = vrot.slane %v1591_v16, %v2102_v23 }
 0x2fb   :  { %v1078_v60 = vpop.f32.mrb[10].mxu1  ;;  %v1294_v61 = vpop.f32.mrb[12].mxu0 }
 0x2fc   :  { %v1560_v62 = vmul.f32 %v1078_v60, %v2133_v58  ;;  %v1080_v19 = vpop.f32.mrb[11].mxu1  ;;  %v1296_v34 = vpop.f32.mrb[13].mxu0 }
 0x2fd   :  { %v1561_v35 = vmul.f32 %v1080_v19, %v2145_v8  ;;  %v1520_v20 = vcombine.low %v1294_v61, %v1296_v34 }
 0x2ff   :  { %v1575_v57 = vcombine.low %v1560_v62, %v1561_v35  ;;  %v1528_v50 = vrot.slane %v1520_v20, %v2102_v23 }
 0x301   :  { %v1589_v38 = vrot.slane %v1575_v57, %v2102_v23 }
 0x303   :  { %v1590_v39 = vcombine.low %v1582_v31, %v1589_v38  ;;  %v1220_v59 = vpop.f32.mrb[12].mxu1  ;;  %v1436_v41 = vpop.f32.mrb[14].mxu0 }
 0x304   :  { %v1564_v36 = vmul.f32 %v1220_v59, %v2164_v37  ;;  %v1222_v42 = vpop.f32.mrb[13].mxu1  ;;  %v1438_v43 = vpop.f32.mrb[15].mxu0 }
 0x305   :  { %v1565_v44 = vmul.f32 %v1222_v42, %v2170_v40  ;;  %v1537_v58 = vcombine.low %v1436_v41, %v1438_v43 }
 0x307   :  { %v1592_v45 = vcombine.low %v1564_v36, %v1565_v44  ;;  %v1545_v5 = vrot.slane %v1537_v58, %v2102_v23 }
 0x309   :  { %v1606_v8 = vrot.slane %v1592_v45, %v2102_v23 }
 0x30b   :  { %v1607_v46 = vcombine.low %v1599_v29, %v1606_v8  ;;  %v1365_v47 = vpop.f32.mrb[14].mxu1 }
 0x30c   :  { %v1367_v48 = vpop.f32.mrb[15].mxu1 }
 0x30d   :  { %v1521_v49 = vcombine.low %v1365_v47, %v1367_v48 }
 0x30f   :  { %v1535_v51 = vrot.slane %v1521_v49, %v2102_v23 }
 0x311   :  { %v1536_v52 = vcombine.low %v1528_v50, %v1535_v51 }
 0x313   :  { %v1556_v37 = vmul.f32 %v1536_v52, %v2099_v22  ;;  %v1507_v53 = vpop.f32.mrb[16].mxu1 }
 0x314   :  { %v1509_v56 = vpop.f32.mrb[17].mxu1 }
 0x315   :  { %v1538_v40 = vcombine.low %v1507_v53, %v1509_v56  ;;  %v1610_v63 = vadd.f32 %v1590_v39, %v1556_v37 }
 0x317   :  { %v1552_v6 = vrot.slane %v1538_v40, %v2102_v23  ;;  %1612 = vst [vmem:[#allocation10] sm:$0xff] %v1610_v63 }
 0x319   :  { %v1553_v7 = vcombine.low %v1545_v5, %v1552_v6 }
 0x31b   :  { %v1557_v11 = vmul.f32 %v1553_v7, %v2118_v33 }
 0x31d   :  { %v1611_v12 = vadd.f32 %v1607_v46, %v1557_v11 }
 0x31f   :  { %1613 = vst [vmem:[#allocation10 + $0x8] sm:$0xff] %v1611_v12 }
 0x320   :  { %1927 = shalt.err (!%p1924_p8)
}
 0x321   :  { %s1928_s22 = scalar_lea.hbm %s2301_s9, 256 }
 0x322   :  { %p1929_p9 = scmp.ne.s32.totalorder %s2301_s9, %s1928_s22  ;;  %p1932_p10 = scmp.lt.u32.totalorder %s1928_s22, %s2301_s9 }
 0x324   :  { %p1934_p11 = pnand %p1932_p10, %p1929_p9 }
 0x326   :  { %1937 = shalt.err (!%p1934_p11)
}
 0x327   :  { %1633 = dma.vmem_to_hbm [thread:$0]  %s1631_s12, 256, %s2301_s9, [#allocation11]  }
 0x328   :  { %1942 = dma.done.wait [#allocation5], 32  }
 0x329   :  { %1943 = vsyncadd [#allocation5], 4294967264 }
 0x32a   :  { %1944 = dma.done.wait [#allocation11], 256  }
 0x32b   :  { %1945 = vsyncadd [#allocation11], 4294967040 }
 0x32c   :  { %1640 = vsyncpa [#allocation4], 1 }
 0x32d   :  { %1641 = vsyncpa [#allocation7], 1 }
 0x32e   :  { %1642 = vsyncpa [#allocation5], 1 }
 0x32f   :  { %1643 = vsyncpa [#allocation11], 1 }

</bundles_post_ra>
